<compile_context>
chip_gen: v7x
topology: tpu7x:2x2x1
jax: 0.10.0
libtpu: 0.0.40
codegen_flags: <defaults>
</compile_context>

<pallas_src>
import functools

import jax
import jax.numpy as jnp
from jax.experimental import pallas as pl
from jax.experimental.pallas import tpu as pltpu

HIDDEN = 32
LANE = 128


def _ma_ps_dqn_kernel(idx_ref, x_ref, w1_ref, b1_ref, w2_ref, b2_ref,
                      w3_ref, b3_ref, o_ref):
    # idx_ref: SMEM scalar-prefetch ref (agent indices); consumed by the
    # BlockSpec index_maps, unused in the body.
    del idx_ref
    # Layer 1: Linear (bf16 x bf16 -> f32 on MXU) + bias + ReLU in f32.
    h1 = jnp.dot(x_ref[...], w1_ref[...], preferred_element_type=jnp.float32)
    h1 = jnp.maximum(h1 + b1_ref[...], 0.0)
    # Layer 2: Linear + ReLU.
    h2 = jnp.dot(h1.astype(jnp.bfloat16), w2_ref[...],
                 preferred_element_type=jnp.float32)
    h2 = jnp.maximum(h2 + b2_ref[...], 0.0)
    # Agent-specific Q head (weights already selected by the BlockSpec index_map).
    q = jnp.dot(h2.astype(jnp.bfloat16), w3_ref[...],
                preferred_element_type=jnp.float32) + b3_ref[...]
    o_ref[...] = q.astype(o_ref.dtype)


def _pick_tm(batch, tm):
    tm = min(tm, batch)
    if batch % tm != 0:
        tm = batch          # full-extent block is always legal
    return tm


def ma_ps_dqn_forward_multi(states, agent_indices, params, *, tm=128):
    """Evaluate several agent heads in one fused call.

    states:        (B, D_in) float32
    agent_indices: (A,) int32
    returns:       (A, B, D_out) float32
    """
    w1, b1, w2, b2, w3_all, b3_all = params
    B, D_in = states.shape
    num_agents, H, D_out = w3_all.shape
    assert H == HIDDEN
    A = int(agent_indices.shape[0])

    # Lane-dense output: pad the head output dim up to a multiple of 128.
    D_PAD = pl.cdiv(D_out, LANE) * LANE
    TM = _pick_tm(B, tm)
    n_btiles = B // TM

    bf = jnp.bfloat16
    x_bf = states.astype(bf)
    w1_bf = w1.astype(bf)
    w2_bf = w2.astype(bf)
    w3_p = jnp.zeros((num_agents, H, D_PAD), bf).at[:, :, :D_out].set(
        w3_all.astype(bf))
    b3_p = jnp.zeros((num_agents, 1, D_PAD), jnp.float32).at[:, :, :D_out].set(
        b3_all)

    idx = jnp.asarray(agent_indices, dtype=jnp.int32)

    grid_spec = pltpu.PrefetchScalarGridSpec(
        num_scalar_prefetch=1,
        grid=(A, n_btiles),
        in_specs=[
            pl.BlockSpec((TM, D_in), lambda a, i, idx_ref: (i, 0)),       # states
            pl.BlockSpec((D_in, H), lambda a, i, idx_ref: (0, 0)),        # w1
            pl.BlockSpec((1, H), lambda a, i, idx_ref: (0, 0)),           # b1
            pl.BlockSpec((H, H), lambda a, i, idx_ref: (0, 0)),           # w2
            pl.BlockSpec((1, H), lambda a, i, idx_ref: (0, 0)),           # b2
            # Per-agent head, selected via scalar prefetch.
            pl.BlockSpec((pl.Squeezed(), H, D_PAD),
                         lambda a, i, idx_ref: (idx_ref[a], 0, 0)),       # w3[idx[a]]
            pl.BlockSpec((pl.Squeezed(), 1, D_PAD),
                         lambda a, i, idx_ref: (idx_ref[a], 0, 0)),       # b3[idx[a]]
        ],
        out_specs=pl.BlockSpec((pl.Squeezed(), TM, D_PAD),
                               lambda a, i, idx_ref: (a, i, 0)),
    )

    flops = 2 * A * B * (D_in * H + H * H + H * D_PAD)
    bytes_accessed = (
        B * D_in * 2                       # states (bf16)
        + D_in * H * 2 + H * 4             # w1 (bf16) + b1 (f32)
        + H * H * 2 + H * 4                # w2 (bf16) + b2 (f32)
        + A * (H * D_PAD * 2 + D_PAD * 4)  # selected heads
        + A * B * D_PAD * 4                # output (f32)
    )

    out = pl.pallas_call(
        _ma_ps_dqn_kernel,
        out_shape=jax.ShapeDtypeStruct((A, B, D_PAD), jnp.float32),
        grid_spec=grid_spec,
        compiler_params=pltpu.CompilerParams(
            dimension_semantics=("parallel", "parallel")),
        cost_estimate=pl.CostEstimate(
            flops=flops, transcendentals=0, bytes_accessed=bytes_accessed),
    )(idx, x_bf, w1_bf, b1, w2_bf, b2, w3_p, b3_p)

    return out[:, :, :D_out]


def ma_ps_dqn_forward(states, agent_idx, params, *, tm=128):
    """Single-agent forward matching MA_PS_DQN.forward(states, agent_idx)."""
    idx = jnp.asarray([agent_idx], dtype=jnp.int32)
    return ma_ps_dqn_forward_multi(states, idx, params, tm=tm)[0]


def init_params(key, num_agents, input_size, output_size):
    """Deterministic init mimicking torch.nn.Linear (uniform +-1/sqrt(fan_in)).
    Weights stored transposed relative to torch, i.e. (in, out)."""
    ks = jax.random.split(key, 6)

    def lin(kw, kb, fan_in, fan_out):
        bound = 1.0 / jnp.sqrt(fan_in)
        w = jax.random.uniform(kw, (fan_in, fan_out), jnp.float32, -bound, bound)
        b = jax.random.uniform(kb, (1, fan_out), jnp.float32, -bound, bound)
        return w, b

    w1, b1 = lin(ks[0], ks[1], input_size, HIDDEN)
    w2, b2 = lin(ks[2], ks[3], HIDDEN, HIDDEN)
    bound = 1.0 / jnp.sqrt(HIDDEN)
    w3_all = jax.random.uniform(ks[4], (num_agents, HIDDEN, output_size),
                                jnp.float32, -bound, bound)
    b3_all = jax.random.uniform(ks[5], (num_agents, 1, output_size),
                                jnp.float32, -bound, bound)
    return w1, b1, w2, b2, w3_all, b3_all


def reference_forward_f32(states, agent_idx, params):
    w1, b1, w2, b2, w3_all, b3_all = params
    h = jnp.maximum(states @ w1 + b1, 0.0)
    h = jnp.maximum(h @ w2 + b2, 0.0)
    return h @ w3_all[agent_idx] + b3_all[agent_idx]


def reference_forward_bf16(states, agent_idx, params):
    """Reference emulating the kernel's bf16-operand / f32-accumulate math."""
    w1, b1, w2, b2, w3_all, b3_all = params
    bf = jnp.bfloat16
    h = jnp.dot(states.astype(bf), w1.astype(bf),
                preferred_element_type=jnp.float32) + b1
    h = jnp.maximum(h, 0.0)
    h = jnp.dot(h.astype(bf), w2.astype(bf),
                preferred_element_type=jnp.float32) + b2
    h = jnp.maximum(h, 0.0)
    return jnp.dot(h.astype(bf), w3_all[agent_idx].astype(bf),
                   preferred_element_type=jnp.float32) + b3_all[agent_idx]


if __name__ == "__main__":
    key = jax.random.PRNGKey(0)
    num_agents, input_size, output_size = 3, 16, 8
    batch = 256  # two 128-row batch tiles -> exercises the pipelined grid

    k_params, k_x = jax.random.split(key)
    params = init_params(k_params, num_agents, input_size, output_size)
    states = jax.random.normal(k_x, (batch, input_size), jnp.float32)

    # Single-agent forward (matches the PyTorch module's forward signature).
    agent_idx = 1
    q = ma_ps_dqn_forward(states, agent_idx, params)
    jax.block_until_ready(q)
    assert q.shape == (batch, output_size)

    q_ref_bf16 = reference_forward_bf16(states, agent_idx, params)
    q_ref_f32 = reference_forward_f32(states, agent_idx, params)
    assert jnp.allclose(q, q_ref_bf16, atol=1e-3, rtol=1e-3), \
        "mismatch vs bf16-emulated reference"
    assert jnp.allclose(q, q_ref_f32, atol=1e-1, rtol=1e-1), \
        "mismatch vs f32 reference"

    # Batched multi-agent evaluation (one launch for all agents).
    all_agents = jnp.arange(num_agents, dtype=jnp.int32)
    q_all = ma_ps_dqn_forward_multi(states, all_agents, params)
    jax.block_until_ready(q_all)
    assert q_all.shape == (num_agents, batch, output_size)
    for a in range(num_agents):
        ref_a = reference_forward_bf16(states, a, params)
        assert jnp.allclose(q_all[a], ref_a, atol=1e-3, rtol=1e-3), \
            f"mismatch for agent {a}"

    print("KERNEL_OK")
</pallas_src>

<mosaic_0001>
module attributes {stable_mosaic.version = 11 : i64} {
  func.func @_ma_ps_dqn_kernel(%arg0: i32, %arg1: i32, %arg2: memref<1xi32, #tpu.memory_space<smem>>, %arg3: memref<128x16xbf16, #tpu.memory_space<vmem>>, %arg4: memref<16x32xbf16, #tpu.memory_space<vmem>>, %arg5: memref<1x32xf32, #tpu.memory_space<vmem>>, %arg6: memref<32x32xbf16, #tpu.memory_space<vmem>>, %arg7: memref<1x32xf32, #tpu.memory_space<vmem>>, %arg8: memref<1x32x128xbf16, #tpu.memory_space<vmem>>, %arg9: memref<1x1x128xf32, #tpu.memory_space<vmem>>, %arg10: memref<1x128x128xf32, #tpu.memory_space<vmem>>) attributes {dimension_semantics = [#tpu.dimension_semantics<parallel>, #tpu.dimension_semantics<parallel>], iteration_bounds = array<i64: 1, 2>, scalar_prefetch = 1 : i64, scratch_operands = 0 : i64, tpu.core_type = #tpu.core_type<tc>, window_params = [{transform_indices = @transform_0, window_bounds = array<i64: 128, 16>}, {pipeline_mode = #tpu.pipeline_mode<synchronous>, transform_indices = @transform_1, window_bounds = array<i64: 16, 32>}, {pipeline_mode = #tpu.pipeline_mode<synchronous>, transform_indices = @transform_2, window_bounds = array<i64: 1, 32>}, {pipeline_mode = #tpu.pipeline_mode<synchronous>, transform_indices = @transform_3, window_bounds = array<i64: 32, 32>}, {pipeline_mode = #tpu.pipeline_mode<synchronous>, transform_indices = @transform_4, window_bounds = array<i64: 1, 32>}, {transform_indices = @transform_5, window_bounds = array<i64: 1, 32, 128>}, {transform_indices = @transform_6, window_bounds = array<i64: 1, 1, 128>}, {transform_indices = @transform_7, window_bounds = array<i64: 1, 128, 128>}]} {
    %c0 = arith.constant 0 : index
    %c0_0 = arith.constant 0 : index
    %0 = vector.load %arg3[%c0, %c0_0] : memref<128x16xbf16, #tpu.memory_space<vmem>>, vector<128x16xbf16>
    %c0_1 = arith.constant 0 : index
    %c0_2 = arith.constant 0 : index
    %1 = vector.load %arg4[%c0_1, %c0_2] : memref<16x32xbf16, #tpu.memory_space<vmem>>, vector<16x32xbf16>
    %cst = arith.constant dense<0.000000e+00> : vector<128x32xf32>
    %2 = tpu.matmul %0, %1, %cst {dimension_numbers = #tpu.dot_dimension_numbers<[1], [0], [0], [1], [0, 0, 1, 1], [], []>} : vector<128x16xbf16>, vector<16x32xbf16>, vector<128x32xf32> -> vector<128x32xf32>
    %c0_3 = arith.constant 0 : index
    %c0_4 = arith.constant 0 : index
    %3 = vector.load %arg5[%c0_3, %c0_4] : memref<1x32xf32, #tpu.memory_space<vmem>>, vector<1x32xf32>
    %4 = vector.broadcast %3 : vector<1x32xf32> to vector<128x32xf32>
    %5 = arith.addf %2, %4 : vector<128x32xf32>
    %cst_5 = arith.constant 0.000000e+00 : f32
    %6 = vector.broadcast %cst_5 : f32 to vector<128x32xf32>
    %7 = arith.maximumf %5, %6 : vector<128x32xf32>
    %8 = arith.truncf %7 : vector<128x32xf32> to vector<128x32xbf16>
    %c0_6 = arith.constant 0 : index
    %c0_7 = arith.constant 0 : index
    %9 = vector.load %arg6[%c0_6, %c0_7] : memref<32x32xbf16, #tpu.memory_space<vmem>>, vector<32x32xbf16>
    %cst_8 = arith.constant dense<0.000000e+00> : vector<128x32xf32>
    %10 = tpu.matmul %8, %9, %cst_8 {dimension_numbers = #tpu.dot_dimension_numbers<[1], [0], [0], [1], [0, 0, 1, 1], [], []>} : vector<128x32xbf16>, vector<32x32xbf16>, vector<128x32xf32> -> vector<128x32xf32>
    %c0_9 = arith.constant 0 : index
    %c0_10 = arith.constant 0 : index
    %11 = vector.load %arg7[%c0_9, %c0_10] : memref<1x32xf32, #tpu.memory_space<vmem>>, vector<1x32xf32>
    %12 = vector.broadcast %11 : vector<1x32xf32> to vector<128x32xf32>
    %13 = arith.addf %10, %12 : vector<128x32xf32>
    %cst_11 = arith.constant 0.000000e+00 : f32
    %14 = vector.broadcast %cst_11 : f32 to vector<128x32xf32>
    %15 = arith.maximumf %13, %14 : vector<128x32xf32>
    %16 = arith.truncf %15 : vector<128x32xf32> to vector<128x32xbf16>
    %c0_12 = arith.constant 0 : index
    %c0_13 = arith.constant 0 : index
    %c0_14 = arith.constant 0 : index
    %17 = vector.load %arg8[%c0_12, %c0_13, %c0_14] : memref<1x32x128xbf16, #tpu.memory_space<vmem>>, vector<1x32x128xbf16>
    %18 = vector.shape_cast %17 : vector<1x32x128xbf16> to vector<32x128xbf16>
    %cst_15 = arith.constant dense<0.000000e+00> : vector<128x128xf32>
    %19 = tpu.matmul %16, %18, %cst_15 {dimension_numbers = #tpu.dot_dimension_numbers<[1], [0], [0], [1], [0, 0, 1, 1], [], []>} : vector<128x32xbf16>, vector<32x128xbf16>, vector<128x128xf32> -> vector<128x128xf32>
    %c0_16 = arith.constant 0 : index
    %c0_17 = arith.constant 0 : index
    %c0_18 = arith.constant 0 : index
    %20 = vector.load %arg9[%c0_16, %c0_17, %c0_18] : memref<1x1x128xf32, #tpu.memory_space<vmem>>, vector<1x1x128xf32>
    %21 = vector.shape_cast %20 : vector<1x1x128xf32> to vector<1x128xf32>
    %22 = vector.broadcast %21 : vector<1x128xf32> to vector<128x128xf32>
    %23 = arith.addf %19, %22 : vector<128x128xf32>
    %c0_19 = arith.constant 0 : index
    %c0_20 = arith.constant 0 : index
    %c0_21 = arith.constant 0 : index
    %24 = vector.load %arg10[%c0_19, %c0_20, %c0_21] : memref<1x128x128xf32, #tpu.memory_space<vmem>>, vector<1x128x128xf32>
    %25 = vector.shape_cast %24 : vector<1x128x128xf32> to vector<128x128xf32>
    %26 = vector.shape_cast %23 : vector<128x128xf32> to vector<1x128x128xf32>
    tpu.vector_store %arg10[%c0_19, %c0_20, %c0_21], %26 {strides = array<i32>} : memref<1x128x128xf32, #tpu.memory_space<vmem>>, vector<1x128x128xf32>,
    return
  }
  func.func @transform_0(%arg0: i32, %arg1: i32, %arg2: memref<1xi32, #tpu.memory_space<smem>>) -> (i32, i32) {
    %c0_i32 = arith.constant 0 : i32
    %c0_i32_0 = arith.constant 0 : i32
    return %arg1, %c0_i32 : i32, i32
  }
  func.func @transform_1(%arg0: i32, %arg1: i32, %arg2: memref<1xi32, #tpu.memory_space<smem>>) -> (i32, i32) {
    %c0_i32 = arith.constant 0 : i32
    %c0_i32_0 = arith.constant 0 : i32
    %c0_i32_1 = arith.constant 0 : i32
    return %c0_i32, %c0_i32_0 : i32, i32
  }
  func.func @transform_2(%arg0: i32, %arg1: i32, %arg2: memref<1xi32, #tpu.memory_space<smem>>) -> (i32, i32) {
    %c0_i32 = arith.constant 0 : i32
    %c0_i32_0 = arith.constant 0 : i32
    %c0_i32_1 = arith.constant 0 : i32
    return %c0_i32, %c0_i32_0 : i32, i32
  }
  func.func @transform_3(%arg0: i32, %arg1: i32, %arg2: memref<1xi32, #tpu.memory_space<smem>>) -> (i32, i32) {
    %c0_i32 = arith.constant 0 : i32
    %c0_i32_0 = arith.constant 0 : i32
    %c0_i32_1 = arith.constant 0 : i32
    return %c0_i32, %c0_i32_0 : i32, i32
  }
  func.func @transform_4(%arg0: i32, %arg1: i32, %arg2: memref<1xi32, #tpu.memory_space<smem>>) -> (i32, i32) {
    %c0_i32 = arith.constant 0 : i32
    %c0_i32_0 = arith.constant 0 : i32
    %c0_i32_1 = arith.constant 0 : i32
    return %c0_i32, %c0_i32_0 : i32, i32
  }
  func.func @transform_5(%arg0: i32, %arg1: i32, %arg2: memref<1xi32, #tpu.memory_space<smem>>) -> (i32, i32, i32) {
    %0 = arith.index_cast %arg0 : i32 to index
    %1 = memref.load %arg2[%0] : memref<1xi32, #tpu.memory_space<smem>>
    %c0_i32 = arith.constant 0 : i32
    %c0_i32_0 = arith.constant 0 : i32
    %c0_i32_1 = arith.constant 0 : i32
    return %1, %c0_i32, %c0_i32_0 : i32, i32, i32
  }
  func.func @transform_6(%arg0: i32, %arg1: i32, %arg2: memref<1xi32, #tpu.memory_space<smem>>) -> (i32, i32, i32) {
    %0 = arith.index_cast %arg0 : i32 to index
    %1 = memref.load %arg2[%0] : memref<1xi32, #tpu.memory_space<smem>>
    %c0_i32 = arith.constant 0 : i32
    %c0_i32_0 = arith.constant 0 : i32
    %c0_i32_1 = arith.constant 0 : i32
    return %1, %c0_i32, %c0_i32_0 : i32, i32, i32
  }
  func.func @transform_7(%arg0: i32, %arg1: i32, %arg2: memref<1xi32, #tpu.memory_space<smem>>) -> (i32, i32, i32) {
    %c0_i32 = arith.constant 0 : i32
    %c0_i32_0 = arith.constant 0 : i32
    return %arg0, %arg1, %c0_i32 : i32, i32, i32
  }
}

</mosaic_0001>

<bundles_post_ra>
// kernel: tpu_custom_call.1
= control target key start
LH: loop header
LB: loop body
LE: loop exit
PB: predicated region body
PF: predicated region fallthrough
CT: control target
= control target key end

     0   :  { %s1544_s0 = inlined_call_operand.<no memory space> [shape: s32[1], index: 0, kind: input, shape index: {}]   ;;  %s1545_s1 = inlined_call_operand.vmem [shape: bf16[256,16], index: 1, kind: input, shape index: {}]   ;;  %s1546_s2 = inlined_call_operand.vmem [shape: bf16[16,32], index: 2, kind: input, shape index: {}]   ;;  %s1547_s3 = inlined_call_operand.vmem [shape: f32[1,32], index: 3, kind: input, shape index: {}]   ;;  %s1548_s4 = inlined_call_operand.vmem [shape: bf16[32,32], index: 4, kind: input, shape index: {}]   ;;  %s1549_s5 = inlined_call_operand.vmem [shape: f32[1,32], index: 5, kind: input, shape index: {}]   ;;  %s1550_s6 = inlined_call_operand.vmem [shape: bf16[3,32,128], index: 6, kind: input, shape index: {}]   ;;  %s1551_s7 = inlined_call_operand.vmem [shape: f32[3,1,128], index: 7, kind: input, shape index: {}]   ;;  %s1552_s8 = inlined_call_operand.hbm [shape: f32[1,256,128], index: 8, kind: output, shape index: {}]  }
   0x1   :  { %13 = sst [smem:[#allocation3]] %s1544_s0 }
   0x2   :  { %14 = vsyncpa [#allocation5], 0 }
   0x3   :  { %16 = vsyncpa [#allocation5 + $0x1], 0  ;;  %s1354_s29 = smov 0   ;;  %s1356_s30 = smov 0  }
   0x4   :  { %s1358_s9 = smov 0   ;;  %s1360_s10 = smov 0  }
   0x5   :  { %s1362_s11 = smov 0   ;;  %s1364_s12 = smov 0  }
   0x6 LB: > { %s1007_s0 = sadd.s32 4294967295, %s1301_s12   ;;  %s1008_s13 = sadd.s32 4294967294, %s1301_s12   ;;  %s1301_s12 = sphi %s1364_s12, %s22_s12   ;;  %s1297_s11 = sphi %s1362_s11, %s1559_s11   ;;  %s1293_s10 = sphi %s1360_s10, %s1558_s10   ;;  %s1289_s9 = sphi %s1358_s9, %s1557_s9   ;;  %s1285_s30 = sphi %s1356_s30, %s1556_s30   ;;  %s1281_s29 = sphi %s1354_s29, %s1555_s29  }
   0x7   : > { %s31_s14 = sadd.s32 1, %s1297_s11  ;;  %s209_s15 = sadd.s32 1, %s1289_s9 }
   0x8   : > { %p32_p0 = scmp.ge.s32.totalorder %s31_s14, 2  ;;  %p219_p1 = scmp.ne.s32.totalorder %s1289_s9, %s1285_s30 }
   0x9   : > { %p220_p2 = scmp.eq.s32.totalorder %s1007_s0, 1  ;;  %p225_p3 = scmp.ne.s32.totalorder %s1285_s30, %s1281_s29 }
   0xa   : > { %s1561_s14 = smov (%p32_p0, %s31_s14), 0  ;;  %p226_p5 = scmp.eq.s32.totalorder %s1008_s13, 1 }
   0xb   : > { %p1394_p4 = por %p220_p2, %p219_p1  ;;  %s205_s17 = ssub.s32 %s1297_s11, %s1561_s14 }
   0xc   : > { %p1011_p6 = scmp.ge.s32.totalorder %s1301_s12, 1  ;;  %p207_p7 = scmp.eq.s32.totalorder %s205_s17, 0 }
   0xd   : > { %p1401_p8 = por %p226_p5, %p225_p3  ;;  %p283_p9 = scmp.lt.s32.totalorder %s1301_s12, 3 }
   0xe   : > { %s1407_s19 = scalar_select %p207_p7, %s1289_s9, %s209_s15  }
   0xf   : > { %p284_p10 = pnand %p1011_p6, %p283_p9 }
  0x10   : > { %v1210_v0 = vld [vmem:[%s1546_s2] sm:$0xff] (!%p284_p10)   ;;  %s1013_s22 = sshll.u32 (!%p284_p10), %s1293_s10, 4  ;;  %vm416_vm0 = vcmask (!%p284_p10), 130048   ;;  %v1220_v10 = vld [vmem:[%s1548_s4 + $0x8] sm:$0xff] (!%p284_p10)   ;;  %s331_s15 = sld [smem:[#allocation3]] (!%p284_p10)  ;;  %vm585_vm1 = vcmask (!%p284_p10), 261120  }
  0x11   : > { %287 = sbr.rel (%p284_p10) target bundleno = 729 (0x2d9), region = 48  ;;  %p326_p11 = scmp.lt.s32.totalorder (!%p284_p10), %s1013_s22, 31  ;;  %1093 = vmatprep.subr.bf16.mxu0 (!%p284_p10), %v1210_v0  ;;  %1151 = vmatprep.subr.bf16.mxu1 (!%p284_p10), %v1210_v0  ;;  %v1219_v1 = vld [vmem:[%s1548_s4] sm:$0xff] (!%p284_p10)  }
  0x12   : > { %1094 = vmatpush3.bf16.msra.mxu0 (!%p284_p10), %v1210_v0  ;;  %1152 = vmatpush3.bf16.msra.mxu1 (!%p284_p10), %v1210_v0  ;;  %v1017_v12 = vld [vmem:[%s1547_s3] ss:$0 sm:$0xff] (!%p284_p10)  ;;  %s322_s27 = sand.u32 (!%p284_p10), 1, %s1285_s30   ;;  %s1303_s26 = smov (!%p284_p10), [#allocation4]  }
  0x13   : > { %1111 = vmatprep.subr.bf16.mxu1 (!%p284_p10), %v1219_v1 }
  0x16   : > { %p332_p12 = scmp.lt.s32.totalorder (!%p284_p10), %s331_s15, 2 }
  0x18   : > { %s1563_s22 = smov (!%p326_p11, %s1013_s22), 31  ;;  %s1565_s15 = smov (!%p332_p12, %s331_s15), 2 }
  0x19   : > { %s1014_s25 = sshll.u32 %s1563_s22, 2  ;;  %s1062_s17 = sshll.u32 %s1565_s15, 4 }
  0x1a   : > { %s329_s28 = scalar_lea.vmem %s1545_s1, %s1014_s25  ;;  %s1436_s22 = scalar_lea.vmem %s1550_s6, %s1062_s17 }
  0x1b   : > { %v1211_v2 = vld [vmem:[%s329_s28] sm:$0xff]   ;;  %v1212_v3 = vld [vmem:[%s329_s28 + $0x8] sm:$0xff]   ;;  %v1213_v4 = vld [vmem:[%s329_s28 + $0x10] sm:$0xff]   ;;  %s341_s13 = scalar_lea.vmem %s1551_s7, %s1565_s15  ;;  %s1012_s17 = sshll.u32 %s322_s27, 7 }
  0x1c   : > { %1095 = vmatprep.mubr.msk.bf16.mxu0 %vm416_vm0, %v1211_v2  ;;  %v1215_v5 = vld [vmem:[%s329_s28 + $0x20] sm:$0xff]   ;;  %v1216_v6 = vld [vmem:[%s329_s28 + $0x28] sm:$0xff]   ;;  %v1217_v7 = vld [vmem:[%s329_s28 + $0x30] sm:$0xff]   ;;  %s1469_s20 = scalar_lea.vmem [#allocation4], %s1012_s17  ;;  %s1063_s15 = sshll.u32 %s1293_s10, 11 }
  0x1d   : > { %1096 = vmatmul.mubr.msk.bf16.vlgmr.msra.gmra.mrb[0].mxu0 %vm416_vm0, %v1212_v3  ;;  %1103 = vmatprep.mubr.msk.bf16.mxu1 %vm416_vm0, %v1215_v5  ;;  %v1214_v8 = vld [vmem:[%s329_s28 + $0x18] sm:$0xff]   ;;  %v1221_v11 = vld [vmem:[%s1436_s22] sm:$0xff]   ;;  %v1222_v5 = vld [vmem:[%s1436_s22 + $0x8] sm:$0xff]   ;;  %s907_s21 = sshll.u32 %s1469_s20, 4  ;;  %s1489_s24 = scalar_lea.hbm %s1552_s8, %s1063_s15  ;;  %s1491_s21 = int_to_ptr.vmem [resolvable:$true] %s907_s21 }
  0x1e   : > { %1099 = vmatprep.mubr.msk.bf16.mxu0 %vm416_vm0, %v1213_v4  ;;  %1104 = vmatmul.mubr.msk.bf16.vlgmr.msra.gmra.mrb[0].mxu1 %vm416_vm0, %v1216_v6  ;;  %v1218_v9 = vld [vmem:[%s329_s28 + $0x38] sm:$0xff]   ;;  %v1035_v6 = vld [vmem:[%s1549_s5] ss:$0 sm:$0xff]  ;;  %s1498_s10 = scalar_lea.sflag [#allocation5], %s322_s27  ;;  %s1223_s25 = scalar_lea.vmem %s1491_s21, 2048 }
  0x1f   : > { %1107 = vmatprep.mubr.msk.bf16.mxu1 %vm416_vm0, %v1217_v7  ;;  %1112 = vmatpush3.bf16.msra.mxu1 %v1219_v1  ;;  %p1224_p13 = scmp.ne.s32.totalorder %s1491_s21, %s1223_s25  ;;  %s1227_s28 = sshll.u32 %s1303_s26, 4  ;;  %s1228_s28 = int_to_ptr.vmem [resolvable:$false] %s1227_s28 }
  0x20   : > { %1113 = vmatprep.subr.bf16.mxu1 %v1220_v10  ;;  %1131 = vmatprep.subr.bf16.mxu0 %v1221_v11  ;;  %s1229_s0 = scalar_lea.vmem %s1228_s28, 4096  ;;  %p1230_p2 = scmp.lt.s32.totalorder %s1491_s21, %s1228_s28 }
  0x21   : > { %1132 = vmatpush3.bf16.msra.mxu0 %v1221_v11  ;;  %p1225_p0 = pnand %p1224_p13, %p1394_p4  ;;  %p1231_p3 = scmp.lt.s32.totalorder %s1229_s0, %s1223_s25 }
  0x22   : > { %1133 = vmatprep.subr.bf16.mxu0 %v1222_v5 }
  0x23   : > { %1114 = vmatpush3.bf16.msra.mxu1 %v1220_v10  ;;  %p1226_p1 = pneg %p1225_p0  ;;  %p1232_p5 = por %p1231_p3, %p1230_p2 }
  0x25   : > { %1100 = vmatmul.mubr.msk.bf16.gmra.mrb[4].mxu0 %vm416_vm0, %v1214_v8  ;;  %p1233_p6 = pnand %p1232_p5, %p1226_p1 }
  0x26   : > { %1108 = vmatmul.mubr.msk.bf16.gmra.mrb[4].mxu1 %vm416_vm0, %v1218_v9  ;;  %1134 = vmatpush3.bf16.msra.mxu0 %v1222_v5 }
  0xf0   : > { %v1097_v13 = vpop.f32.mrb[0].mxu0 }
  0xf1   : > { %v484_v14 = vadd.f32 %v1097_v13, %v1017_v12  ;;  %v475_v15 = vpop.f32.mrb[1].mxu0  ;;  %v1105_v21 = vpop.f32.mrb[0].mxu1 }
  0xf2   : > { %v476_v16 = vadd.f32 %v1017_v12, %v475_v15  ;;  %v1098_v17 = vpop.f32.mrb[2].mxu0  ;;  %v516_v24 = vadd.f32 %v1105_v21, %v1017_v12  ;;  %v507_v25 = vpop.f32.mrb[1].mxu1 }
  0xf3   : > { %v487_v18 = vadd.f32 %v1098_v17, %v1017_v12  ;;  %v478_v19 = vpop.f32.mrb[3].mxu0  ;;  %v540_v22 = vmax.f32 %v484_v14, 0.0  ;;  %v508_v28 = vadd.f32 %v1017_v12, %v507_v25  ;;  %v1106_v29 = vpop.f32.mrb[2].mxu1 }
  0xf4   : > { %v479_v20 = vadd.f32 %v1017_v12, %v478_v19  ;;  %v538_v26 = vmax.f32 %v476_v16, 0.0  ;;  %v548_v31 = vmax.f32 %v516_v24, 0.0  ;;  %v519_v32 = vadd.f32 %v1106_v29, %v1017_v12  ;;  %v510_v33 = vpop.f32.mrb[3].mxu1 }
  0xf5   : > { %v541_v23 = vmax.f32 %v487_v18, 0.0  ;;  %v546_v36 = vmax.f32 %v508_v28, 0.0  ;;  %v511_v37 = vadd.f32 %v1017_v12, %v510_v33 }
  0xf6   : > { %v539_v27 = vmax.f32 %v479_v20, 0.0  ;;  %v549_v40 = vmax.f32 %v519_v32, 0.0 }
  0xf7   : > { %v555_v30 = vpack.c.bf16 %v541_v23, %v540_v22  ;;  %v547_v43 = vmax.f32 %v511_v37, 0.0 }
  0xf8   : > { %v554_v34 = vpack.c.bf16 %v539_v27, %v538_v26  ;;  %v1101_v35 = vpop.f32.mrb[4].mxu0  ;;  %v559_v46 = vpack.c.bf16 %v549_v40, %v548_v31 }
  0xf9   : > { %v500_v38 = vadd.f32 %v1101_v35, %v1017_v12  ;;  %v491_v39 = vpop.f32.mrb[5].mxu0  ;;  %v558_v48 = vpack.c.bf16 %v547_v43, %v546_v36  ;;  %v1109_v49 = vpop.f32.mrb[4].mxu1 }
  0xfa   : > { %v492_v41 = vadd.f32 %v1017_v12, %v491_v39  ;;  %v1102_v42 = vpop.f32.mrb[6].mxu0  ;;  %1115 = vmatprep.mubr.msk.bf16.mxu1 %vm585_vm1, %v554_v34  ;;  %v532_v52 = vadd.f32 %v1109_v49, %v1017_v12  ;;  %v523_v53 = vpop.f32.mrb[5].mxu1 }
  0xfb   : > { %v503_v44 = vadd.f32 %v1102_v42, %v1017_v12  ;;  %v494_v45 = vpop.f32.mrb[7].mxu0  ;;  %1116 = vmatmul.mubr.msk.bf16.vlgmr.msra.gmra.mrb[8].mxu1 %vm585_vm1, %v555_v30  ;;  %v544_v50 = vmax.f32 %v500_v38, 0.0  ;;  %v524_v56 = vadd.f32 %v1017_v12, %v523_v53  ;;  %v1110_v57 = vpop.f32.mrb[6].mxu1 }
  0xfc   : > { %v495_v47 = vadd.f32 %v1017_v12, %v494_v45  ;;  %v542_v54 = vmax.f32 %v492_v41, 0.0  ;;  %v552_v59 = vmax.f32 %v532_v52, 0.0  ;;  %v535_v60 = vadd.f32 %v1110_v57, %v1017_v12  ;;  %v526_v61 = vpop.f32.mrb[7].mxu1 }
  0xfd   : > { %v545_v51 = vmax.f32 %v503_v44, 0.0  ;;  %v550_v63 = vmax.f32 %v524_v56, 0.0  ;;  %v527_v0 = vadd.f32 %v1017_v12, %v526_v61 }
  0xfe   : > { %v543_v55 = vmax.f32 %v495_v47, 0.0  ;;  %v553_v1 = vmax.f32 %v535_v60, 0.0 }
  0xff   : > { %v557_v58 = vpack.c.bf16 %v545_v51, %v544_v50  ;;  %v551_v2 = vmax.f32 %v527_v0, 0.0 }
 0x100   : > { %v556_v62 = vpack.c.bf16 %v543_v55, %v542_v54  ;;  %v561_v3 = vpack.c.bf16 %v553_v1, %v552_v59 }
 0x101   : > { %v560_v4 = vpack.c.bf16 %v551_v2, %v550_v63  ;;  %v1046_v63 = vld [vmem:[%s341_s13] ss:$0 sm:$0xff] }
 0x102   : > { %1119 = vmatprep.mubr.msk.bf16.mxu1 %vm585_vm1, %v556_v62 }
 0x103   : > { %1120 = vmatmul.mubr.msk.bf16.gmra.mrb[12].mxu1 %vm585_vm1, %v557_v58 }
 0x104   : > { %1123 = vmatprep.mubr.msk.bf16.mxu1 %vm585_vm1, %v558_v48 }
 0x10b   : > { %1124 = vmatmul.mubr.msk.bf16.gmra.mrb[16].mxu1 %vm585_vm1, %v559_v46 }
 0x10c   : > { %1127 = vmatprep.mubr.msk.bf16.mxu1 %vm585_vm1, %v560_v4 }
 0x113   : > { %1128 = vmatmul.mubr.msk.bf16.gmra.mrb[20].mxu1 %vm585_vm1, %v561_v3 }
 0x1ce   : > { %v1117_v7 = vpop.f32.mrb[8].mxu1 }
 0x1cf   : > { %v653_v8 = vadd.f32 %v1117_v7, %v1035_v6  ;;  %v644_v9 = vpop.f32.mrb[9].mxu1 }
 0x1d0   : > { %v645_v10 = vadd.f32 %v1035_v6, %v644_v9  ;;  %v1118_v11 = vpop.f32.mrb[10].mxu1 }
 0x1d1   : > { %v656_v12 = vadd.f32 %v1118_v11, %v1035_v6  ;;  %v647_v13 = vpop.f32.mrb[11].mxu1  ;;  %v709_v15 = vmax.f32 %v653_v8, 0.0 }
 0x1d2   : > { %v648_v14 = vadd.f32 %v1035_v6, %v647_v13  ;;  %v707_v17 = vmax.f32 %v645_v10, 0.0 }
 0x1d3   : > { %v710_v16 = vmax.f32 %v656_v12, 0.0 }
 0x1d4   : > { %v708_v18 = vmax.f32 %v648_v14, 0.0 }
 0x1d5   : > { %v724_v19 = vpack.c.bf16 %v710_v16, %v709_v15 }
 0x1d6   : > { %v723_v20 = vpack.c.bf16 %v708_v18, %v707_v17  ;;  %v1121_v21 = vpop.f32.mrb[12].mxu1 }
 0x1d7   : > { %v669_v22 = vadd.f32 %v1121_v21, %v1035_v6  ;;  %v660_v23 = vpop.f32.mrb[13].mxu1 }
 0x1d8   : > { %v661_v24 = vadd.f32 %v1035_v6, %v660_v23  ;;  %v1122_v25 = vpop.f32.mrb[14].mxu1  ;;  %1135 = vmatprep.mubr.msk.bf16.mxu0 %vm585_vm1, %v723_v20 }
 0x1d9   : > { %v672_v26 = vadd.f32 %v1122_v25, %v1035_v6  ;;  %v663_v27 = vpop.f32.mrb[15].mxu1  ;;  %1136 = vmatmul.mubr.msk.bf16.vlgmr.msra.gmra.mrb[8].mxu0 %vm585_vm1, %v724_v19  ;;  %v713_v29 = vmax.f32 %v669_v22, 0.0 }
 0x1da   : > { %v664_v28 = vadd.f32 %v1035_v6, %v663_v27  ;;  %v711_v31 = vmax.f32 %v661_v24, 0.0 }
 0x1db   : > { %v714_v30 = vmax.f32 %v672_v26, 0.0 }
 0x1dc   : > { %v712_v32 = vmax.f32 %v664_v28, 0.0 }
 0x1dd   : > { %v726_v33 = vpack.c.bf16 %v714_v30, %v713_v29 }
 0x1de   : > { %v725_v34 = vpack.c.bf16 %v712_v32, %v711_v31  ;;  %v1125_v35 = vpop.f32.mrb[16].mxu1 }
 0x1df   : > { %v685_v36 = vadd.f32 %v1125_v35, %v1035_v6  ;;  %v676_v37 = vpop.f32.mrb[17].mxu1 }
 0x1e0   : > { %v677_v38 = vadd.f32 %v1035_v6, %v676_v37  ;;  %v1126_v39 = vpop.f32.mrb[18].mxu1  ;;  %1139 = vmatprep.mubr.msk.bf16.mxu0 %vm585_vm1, %v725_v34 }
 0x1e1   : > { %v688_v40 = vadd.f32 %v1126_v39, %v1035_v6  ;;  %v679_v41 = vpop.f32.mrb[19].mxu1  ;;  %1140 = vmatmul.mubr.msk.bf16.gmra.mrb[12].mxu0 %vm585_vm1, %v726_v33  ;;  %v717_v43 = vmax.f32 %v685_v36, 0.0 }
 0x1e2   : > { %v680_v42 = vadd.f32 %v1035_v6, %v679_v41  ;;  %v715_v45 = vmax.f32 %v677_v38, 0.0 }
 0x1e3   : > { %v718_v44 = vmax.f32 %v688_v40, 0.0 }
 0x1e4   : > { %v716_v46 = vmax.f32 %v680_v42, 0.0 }
 0x1e5   : > { %v728_v47 = vpack.c.bf16 %v718_v44, %v717_v43 }
 0x1e6   : > { %v727_v48 = vpack.c.bf16 %v716_v46, %v715_v45  ;;  %v1129_v49 = vpop.f32.mrb[20].mxu1 }
 0x1e7   : > { %v701_v50 = vadd.f32 %v1129_v49, %v1035_v6  ;;  %v692_v51 = vpop.f32.mrb[21].mxu1 }
 0x1e8   : > { %v693_v52 = vadd.f32 %v1035_v6, %v692_v51  ;;  %v1130_v53 = vpop.f32.mrb[22].mxu1  ;;  %1143 = vmatprep.mubr.msk.bf16.mxu0 %vm585_vm1, %v727_v48 }
 0x1e9   : > { %v704_v54 = vadd.f32 %v1130_v53, %v1035_v6  ;;  %v695_v55 = vpop.f32.mrb[23].mxu1  ;;  %1144 = vmatmul.mubr.msk.bf16.gmra.mrb[16].mxu0 %vm585_vm1, %v728_v47  ;;  %v721_v57 = vmax.f32 %v701_v50, 0.0 }
 0x1ea   : > { %v696_v56 = vadd.f32 %v1035_v6, %v695_v55  ;;  %v719_v59 = vmax.f32 %v693_v52, 0.0 }
 0x1eb   : > { %v722_v58 = vmax.f32 %v704_v54, 0.0 }
 0x1ec   : > { %v720_v60 = vmax.f32 %v696_v56, 0.0 }
 0x1ed   : > { %v730_v61 = vpack.c.bf16 %v722_v58, %v721_v57 }
 0x1ee   : > { %v729_v62 = vpack.c.bf16 %v720_v60, %v719_v59 }
 0x1f0   : > { %1147 = vmatprep.mubr.msk.bf16.mxu0 %vm585_vm1, %v729_v62 }
 0x1f1   : > { %1148 = vmatmul.mubr.msk.bf16.gmra.mrb[20].mxu0 %vm585_vm1, %v730_v61 }
 0x2ac   : > { %v1137_v0 = vpop.f32.mrb[8].mxu0 }
 0x2ad   : > { %v821_v1 = vadd.f32 %v1137_v0, %v1046_v63  ;;  %v812_v2 = vpop.f32.mrb[9].mxu0 }
 0x2ae   : > { %v813_v3 = vadd.f32 %v1046_v63, %v812_v2  ;;  %v1138_v4 = vpop.f32.mrb[10].mxu0 }
 0x2af   : > { %877 = vst [vmem:[%s1469_s20 + $0x10] sm:$0xff] %v821_v1  ;;  %v824_v5 = vadd.f32 %v1138_v4, %v1046_v63  ;;  %v815_v6 = vpop.f32.mrb[11].mxu0 }
 0x2b0   : > { %875 = vst [vmem:[%s1469_s20] sm:$0xff] %v813_v3  ;;  %v816_v7 = vadd.f32 %v1046_v63, %v815_v6 }
 0x2b1   : > { %878 = vst [vmem:[%s1469_s20 + $0x18] sm:$0xff] %v824_v5 }
 0x2b2   : > { %876 = vst [vmem:[%s1469_s20 + $0x8] sm:$0xff] %v816_v7 }
 0x2b4   : > { %v1141_v8 = vpop.f32.mrb[12].mxu0 }
 0x2b5   : > { %v837_v9 = vadd.f32 %v1141_v8, %v1046_v63  ;;  %v828_v10 = vpop.f32.mrb[13].mxu0 }
 0x2b6   : > { %v829_v11 = vadd.f32 %v1046_v63, %v828_v10  ;;  %v1142_v12 = vpop.f32.mrb[14].mxu0 }
 0x2b7   : > { %881 = vst [vmem:[%s1469_s20 + $0x30] sm:$0xff] %v837_v9  ;;  %v840_v13 = vadd.f32 %v1142_v12, %v1046_v63  ;;  %v831_v14 = vpop.f32.mrb[15].mxu0 }
 0x2b8   : > { %879 = vst [vmem:[%s1469_s20 + $0x20] sm:$0xff] %v829_v11  ;;  %v832_v15 = vadd.f32 %v1046_v63, %v831_v14 }
 0x2b9   : > { %882 = vst [vmem:[%s1469_s20 + $0x38] sm:$0xff] %v840_v13 }
 0x2ba   : > { %880 = vst [vmem:[%s1469_s20 + $0x28] sm:$0xff] %v832_v15 }
 0x2bc   : > { %v1145_v16 = vpop.f32.mrb[16].mxu0 }
 0x2bd   : > { %v853_v17 = vadd.f32 %v1145_v16, %v1046_v63  ;;  %v844_v18 = vpop.f32.mrb[17].mxu0 }
 0x2be   : > { %v845_v19 = vadd.f32 %v1046_v63, %v844_v18  ;;  %v1146_v20 = vpop.f32.mrb[18].mxu0 }
 0x2bf   : > { %885 = vst [vmem:[%s1469_s20 + $0x50] sm:$0xff] %v853_v17  ;;  %v856_v21 = vadd.f32 %v1146_v20, %v1046_v63  ;;  %v847_v22 = vpop.f32.mrb[19].mxu0 }
 0x2c0   : > { %883 = vst [vmem:[%s1469_s20 + $0x40] sm:$0xff] %v845_v19  ;;  %v848_v23 = vadd.f32 %v1046_v63, %v847_v22 }
 0x2c1   : > { %886 = vst [vmem:[%s1469_s20 + $0x58] sm:$0xff] %v856_v21 }
 0x2c2   : > { %884 = vst [vmem:[%s1469_s20 + $0x48] sm:$0xff] %v848_v23 }
 0x2c4   : > { %v1149_v24 = vpop.f32.mrb[20].mxu0 }
 0x2c5   : > { %v869_v25 = vadd.f32 %v1149_v24, %v1046_v63  ;;  %v860_v26 = vpop.f32.mrb[21].mxu0 }
 0x2c6   : > { %v861_v27 = vadd.f32 %v1046_v63, %v860_v26  ;;  %v1150_v28 = vpop.f32.mrb[22].mxu0 }
 0x2c7   : > { %889 = vst [vmem:[%s1469_s20 + $0x70] sm:$0xff] %v869_v25  ;;  %v872_v29 = vadd.f32 %v1150_v28, %v1046_v63  ;;  %v863_v30 = vpop.f32.mrb[23].mxu0 }
 0x2c8   : > { %887 = vst [vmem:[%s1469_s20 + $0x60] sm:$0xff] %v861_v27  ;;  %v864_v31 = vadd.f32 %v1046_v63, %v863_v30 }
 0x2c9   : > { %890 = vst [vmem:[%s1469_s20 + $0x78] sm:$0xff] %v872_v29 }
 0x2ca   : > { %888 = vst [vmem:[%s1469_s20 + $0x68] sm:$0xff] %v864_v31 }
 0x2cb   : > { %1236 = shalt.err (!%p1233_p6)
}
 0x2cc   : > { %s1237_s27 = scalar_lea.hbm %s1489_s24, 2048  ;;  %s1241_s20 = scalar_lea.hbm %s1552_s8, 4096 }
 0x2cd   : > { %p1238_p7 = scmp.ne.s32.totalorder %s1489_s24, %s1237_s27  ;;  %p1242_p11 = scmp.lt.u32.totalorder %s1489_s24, %s1552_s8 }
 0x2ce   : > { %p1243_p12 = scmp.lt.u32.totalorder %s1241_s20, %s1237_s27  ;;  %p1245_p0 = scmp.lt.u32.totalorder %s1237_s27, %s1489_s24 }
 0x2cf   : > { %p1239_p9 = pnand %p1238_p7, %p1394_p4 }
 0x2d0   : > { %p1244_p13 = por %p1243_p12, %p1242_p11 }
 0x2d1   : > { %p1240_p10 = pneg %p1239_p9 }
 0x2d2   : > { %p1246_p1 = por %p1245_p0, %p1244_p13 }
 0x2d4   : > { %p1247_p2 = pnand %p1246_p1, %p1240_p10 }
 0x2d6   : > { %1250 = shalt.err (!%p1247_p2)
}
 0x2d7   : > { %s1304_s23 = smov 128   ;;  %s1305_s25 = smov 8  }
 0x2d8   : > { %1153 = dma.vmem_to_hbm [thread:$0]  (%p1394_p4), %s1491_s21, 2048, %s1489_s24, %s1498_s10, %s1304_s23, %s1304_s23, %s1305_s25  }
 0x2d9 PF: > { %p1159_p3 = scmp.ge.s32.totalorder %s1301_s12, 2  ;;  %s922_s26 = sand.u32 1, %s1281_s29  }
 0x2da   : > { %s923_s28 = scalar_lea.sflag [#allocation5], %s922_s26 }
 0x2db   : > { %p1156_p5 = pnand %p1159_p3, %p1401_p8 }
 0x2dd   : > { %1276 = dma.done.wait (!%p1156_p5), %s923_s28, 2048  }
 0x2de   : > { %1278 = vsyncadd (!%p1156_p5), %s923_s28, 4294965248  ;;  %s22_s12 = sadd.s32 1, %s1301_s12   ;;  %s1555_s29 = smov %s1285_s30 }
 0x2df   : > { %p19_p6 = scmp.ge.s32.totalorder %s22_s12, 4   ;;  %s1556_s30 = smov %s1289_s9 }
 0x2e0   : > { %s1557_s9 = smov %s1407_s19  ;;  %s1558_s10 = smov %s1297_s11 }
 0x2e1   : > { %s1559_s11 = smov %s1561_s14  ;;  %21 = sbr.rel (!%p19_p6) target bundleno = 6 (0x6), region = 89 }
 0x2e8   :  { %928 = vsyncpa [#allocation5], 1 }
 0x2e9   :  { %930 = vsyncpa [#allocation5 + $0x1], 1 }

</bundles_post_ra>
